<compile_context>
chip_gen: v6e
topology: v6e:2x2x1
jax: 0.10.0
libtpu: 0.0.40
codegen_flags: <defaults>
</compile_context>

<pallas_src>
import functools

import jax
import jax.numpy as jnp
from jax.experimental import pallas as pl
from jax.experimental.pallas import tpu as pltpu

_LANES = 128


def _custom_loss_kernel(
    w_att_ref,              # SMEM (1,1) f32 : 0.5 * w_att * att_weight_schedule(epoch)
    cbf_p_ref, att_p_ref,   # VMEM (tile_rows, 128) blocks (input dtype)
    cbf_t_ref, att_t_ref,
    cbf_lv_ref, att_lv_ref,
    out_ref,                # VMEM (1, 128) f32 : per-lane partial sums (grid-resident)
    *,
    w_cbf_half: float,
    lam: float,
    cmin: float,
    cmax: float,
    batch: int,
    tile_rows: int,
    need_mask: bool,
):
    step = pl.program_id(0)

    @pl.when(step == 0)
    def _():
        out_ref[...] = jnp.zeros_like(out_ref)

    f32 = jnp.float32
    cbf_err = cbf_p_ref[...].astype(f32) - cbf_t_ref[...].astype(f32)
    att_err = att_p_ref[...].astype(f32) - att_t_ref[...].astype(f32)
    cbf_lv = jnp.clip(cbf_lv_ref[...].astype(f32), cmin, cmax)
    att_lv = jnp.clip(att_lv_ref[...].astype(f32), cmin, cmax)

    # 0.5 and the epoch schedule are already folded into the weights.
    w_att_half = w_att_ref[0, 0]
    term = (w_cbf_half * (jnp.exp(-cbf_lv) * cbf_err * cbf_err + cbf_lv)
            + w_att_half * (jnp.exp(-att_lv) * att_err * att_err + att_lv))
    if lam > 0.0:
        term = term + lam * (cbf_lv * cbf_lv + att_lv * att_lv)

    # Zero-padded elements contribute exactly 0 when 0 is inside [cmin, cmax];
    # the mask is only emitted (compile time) when that does not hold.
    if need_mask:
        row = jax.lax.broadcasted_iota(jnp.int32, term.shape, 0)
        lane = jax.lax.broadcasted_iota(jnp.int32, term.shape, 1)
        flat_idx = (step * tile_rows + row) * _LANES + lane
        term = jnp.where(flat_idx < batch, term, 0.0)

    # Sublane-reduce this block to (1, 128) and accumulate into the resident output.
    out_ref[...] += jnp.sum(term, axis=0, keepdims=True)


def make_custom_loss(
    att_weight_schedule=None,
    log_var_clamp_min: float = -10.0,
    log_var_clamp_max: float = 10.0,
    w_cbf: float = 1.0,
    w_att: float = 1.0,
    log_var_reg_lambda: float = 0.0,
    max_block_rows: int = 1024,   # (rows, 128) per-operand block; 1024 -> 512 KiB f32/block
):
    """Returns loss(cbf_pred, att_pred, cbf_true, att_true, cbf_log_var, att_log_var, epoch)."""
    schedule = att_weight_schedule or (lambda _epoch: 1.0)
    cmin = float(log_var_clamp_min)
    cmax = float(log_var_clamp_max)
    w_cbf_f = float(w_cbf)
    w_att_f = float(w_att)
    lam = float(log_var_reg_lambda)
    max_rows = max(16, (int(max_block_rows) // 16) * 16)  # multiple of 16: ok for f32 & bf16

    def loss_fn(cbf_pred, att_pred, cbf_true, att_true, cbf_log_var, att_log_var, epoch):
        # NOTE: schedule(epoch) is evaluated in Python; epoch must be concrete (not traced).
        operands = (cbf_pred, att_pred, cbf_true, att_true, cbf_log_var, att_log_var)
        arrs = [jnp.asarray(a) for a in operands]
        # Keep bf16 in HBM (half DMA bytes) and upcast in-kernel; otherwise compute in f32.
        in_dtype = jnp.bfloat16 if all(a.dtype == jnp.bfloat16 for a in arrs) else jnp.float32
        flats = [a.astype(in_dtype).reshape(-1) for a in arrs]
        batch = int(flats[0].shape[0])

        rows_needed = -(-batch // _LANES)
        tile_rows = min(max_rows, -(-rows_needed // 16) * 16)
        steps = -(-rows_needed // tile_rows)
        total_rows = steps * tile_rows
        padded = total_rows * _LANES

        # Lane-dense layout plumbing only: zero-width pad is a no-op, reshape is free.
        xs = [jnp.pad(f, (0, padded - batch)).reshape(total_rows, _LANES) for f in flats]

        w_att_eff = jnp.full((1, 1), 0.5 * w_att_f * float(schedule(epoch)), jnp.float32)
        need_mask = (padded != batch) and not (cmin <= 0.0 <= cmax)

        kernel = functools.partial(
            _custom_loss_kernel,
            w_cbf_half=0.5 * w_cbf_f,
            lam=lam,
            cmin=cmin,
            cmax=cmax,
            batch=batch,
            tile_rows=tile_rows,
            need_mask=need_mask,
        )

        itemsize = jnp.dtype(in_dtype).itemsize
        partial_sums = pl.pallas_call(
            kernel,
            out_shape=jax.ShapeDtypeStruct((1, _LANES), jnp.float32),
            grid=(steps,),
            in_specs=[pl.BlockSpec(memory_space=pltpu.MemorySpace.SMEM)]
                     + [pl.BlockSpec((tile_rows, _LANES), lambda i: (i, 0)) for _ in range(6)],
            out_specs=pl.BlockSpec((1, _LANES), lambda i: (0, 0)),
            compiler_params=pltpu.CompilerParams(dimension_semantics=("arbitrary",)),
            cost_estimate=pl.CostEstimate(
                flops=int(26 * padded),
                transcendentals=int(2 * padded),
                bytes_accessed=int(6 * padded * itemsize + 4 * _LANES + 4),
            ),
        )(w_att_eff, *xs)

        # Tiny finalize: cross-lane sum of 128 partials and mean scale.
        return jnp.sum(partial_sums) * (1.0 / batch)

    return loss_fn


def _reference_loss(cbf_pred, att_pred, cbf_true, att_true, cbf_lv, att_lv,
                    epoch, schedule, cmin, cmax, w_cbf, w_att, reg_lambda):
    cbf_lvc = jnp.clip(cbf_lv, cmin, cmax)
    att_lvc = jnp.clip(att_lv, cmin, cmax)
    cbf_nll = 0.5 * (jnp.exp(-cbf_lvc) * (cbf_pred - cbf_true) ** 2 + cbf_lvc)
    att_nll = 0.5 * (jnp.exp(-att_lvc) * (att_pred - att_true) ** 2 + att_lvc)
    total = jnp.mean(w_cbf * cbf_nll + w_att * att_nll * schedule(epoch))
    if reg_lambda > 0:
        total = total + reg_lambda * (jnp.mean(cbf_lvc ** 2) + jnp.mean(att_lvc ** 2))
    return total


if __name__ == "__main__":
    schedule = lambda e: min(1.0, 0.1 * (e + 1))  # example att weight schedule
    epoch = 5

    def make_inputs(b):
        ks = jax.random.split(jax.random.PRNGKey(0), 6)
        outs = []
        for i in range(6):
            x = jax.random.normal(ks[i], (b, 1), jnp.float32)
            outs.append(x * 3.0 if i >= 4 else x)   # log-vars get a wider spread
        return outs

    # --- small-B fast path: single grid step, shapes as the ASL network emits (B, 1) ---
    loss_fn = make_custom_loss(att_weight_schedule=schedule, w_cbf=1.0, w_att=1.0,
                               log_var_reg_lambda=0.01)
    B = 16
    inputs = make_inputs(B)
    loss = loss_fn(*inputs, epoch)
    jax.block_until_ready(loss)
    ref = _reference_loss(*inputs, epoch, schedule, -10.0, 10.0, 1.0, 1.0, 0.01)
    assert jnp.allclose(loss, ref, rtol=1e-5, atol=1e-6), (loss, ref)

    # --- multi-step accumulator + zero-padding path (tiny max_block_rows for testing) ---
    loss_fn_tiled = make_custom_loss(att_weight_schedule=schedule, w_cbf=1.0, w_att=1.0,
                                     log_var_reg_lambda=0.01, max_block_rows=16)
    B2 = 4000   # not a multiple of 128 -> exercises padding; 2 grid steps
    inputs2 = make_inputs(B2)
    loss2 = loss_fn_tiled(*inputs2, epoch)
    jax.block_until_ready(loss2)
    ref2 = _reference_loss(*inputs2, epoch, schedule, -10.0, 10.0, 1.0, 1.0, 0.01)
    assert jnp.allclose(loss2, ref2, rtol=2e-4, atol=1e-5), (loss2, ref2)

    print("KERNEL_OK")
</pallas_src>

<mosaic_0001>
module attributes {stable_mosaic.version = 11 : i64} {
  func.func @_custom_loss_kernel(%arg0: i32, %arg1: memref<1x1xf32, #tpu.memory_space<smem>>, %arg2: memref<16x128xf32, #tpu.memory_space<vmem>>, %arg3: memref<16x128xf32, #tpu.memory_space<vmem>>, %arg4: memref<16x128xf32, #tpu.memory_space<vmem>>, %arg5: memref<16x128xf32, #tpu.memory_space<vmem>>, %arg6: memref<16x128xf32, #tpu.memory_space<vmem>>, %arg7: memref<16x128xf32, #tpu.memory_space<vmem>>, %arg8: memref<1x128xf32, #tpu.memory_space<vmem>>) attributes {dimension_semantics = [#tpu.dimension_semantics<arbitrary>], iteration_bounds = array<i64: 1>, scalar_prefetch = 0 : i64, scratch_operands = 0 : i64, tpu.core_type = #tpu.core_type<tc>, window_params = [{transform_indices = @transform_0, window_bounds = array<i64: 1, 1>}, {transform_indices = @transform_1, window_bounds = array<i64: 16, 128>}, {transform_indices = @transform_2, window_bounds = array<i64: 16, 128>}, {transform_indices = @transform_3, window_bounds = array<i64: 16, 128>}, {transform_indices = @transform_4, window_bounds = array<i64: 16, 128>}, {transform_indices = @transform_5, window_bounds = array<i64: 16, 128>}, {transform_indices = @transform_6, window_bounds = array<i64: 16, 128>}, {pipeline_mode = #tpu.pipeline_mode<synchronous>, transform_indices = @transform_7, window_bounds = array<i64: 1, 128>}]} {
    %c0_i32 = arith.constant 0 : i32
    %0 = arith.cmpi eq, %arg0, %c0_i32 : i32
    %1 = arith.extui %0 : i1 to i32
    %c0_i32_0 = arith.constant 0 : i32
    %2 = arith.cmpi ne, %1, %c0_i32_0 : i32
    scf.if %2 {
      %cst_26 = arith.constant 0.000000e+00 : f32
      %48 = vector.broadcast %cst_26 : f32 to vector<1x128xf32>
      %c0_27 = arith.constant 0 : index
      %c0_28 = arith.constant 0 : index
      %49 = vector.load %arg8[%c0_27, %c0_28] : memref<1x128xf32, #tpu.memory_space<vmem>>, vector<1x128xf32>
      tpu.vector_store %arg8[%c0_27, %c0_28], %48 {strides = array<i32>} : memref<1x128xf32, #tpu.memory_space<vmem>>, vector<1x128xf32>,
    } else {
    }
    %c0 = arith.constant 0 : index
    %c0_1 = arith.constant 0 : index
    %3 = vector.load %arg2[%c0, %c0_1] : memref<16x128xf32, #tpu.memory_space<vmem>>, vector<16x128xf32>
    %c0_2 = arith.constant 0 : index
    %c0_3 = arith.constant 0 : index
    %4 = vector.load %arg4[%c0_2, %c0_3] : memref<16x128xf32, #tpu.memory_space<vmem>>, vector<16x128xf32>
    %5 = arith.subf %3, %4 : vector<16x128xf32>
    %c0_4 = arith.constant 0 : index
    %c0_5 = arith.constant 0 : index
    %6 = vector.load %arg3[%c0_4, %c0_5] : memref<16x128xf32, #tpu.memory_space<vmem>>, vector<16x128xf32>
    %c0_6 = arith.constant 0 : index
    %c0_7 = arith.constant 0 : index
    %7 = vector.load %arg5[%c0_6, %c0_7] : memref<16x128xf32, #tpu.memory_space<vmem>>, vector<16x128xf32>
    %8 = arith.subf %6, %7 : vector<16x128xf32>
    %c0_8 = arith.constant 0 : index
    %c0_9 = arith.constant 0 : index
    %9 = vector.load %arg6[%c0_8, %c0_9] : memref<16x128xf32, #tpu.memory_space<vmem>>, vector<16x128xf32>
    %cst = arith.constant -1.000000e+01 : f32
    %cst_10 = arith.constant 1.000000e+01 : f32
    %10 = vector.broadcast %cst : f32 to vector<16x128xf32>
    %11 = arith.maximumf %10, %9 : vector<16x128xf32>
    %12 = vector.broadcast %cst_10 : f32 to vector<16x128xf32>
    %13 = arith.minimumf %12, %11 : vector<16x128xf32>
    %c0_11 = arith.constant 0 : index
    %c0_12 = arith.constant 0 : index
    %14 = vector.load %arg7[%c0_11, %c0_12] : memref<16x128xf32, #tpu.memory_space<vmem>>, vector<16x128xf32>
    %cst_13 = arith.constant -1.000000e+01 : f32
    %cst_14 = arith.constant 1.000000e+01 : f32
    %15 = vector.broadcast %cst_13 : f32 to vector<16x128xf32>
    %16 = arith.maximumf %15, %14 : vector<16x128xf32>
    %17 = vector.broadcast %cst_14 : f32 to vector<16x128xf32>
    %18 = arith.minimumf %17, %16 : vector<16x128xf32>
    %c0_15 = arith.constant 0 : index
    %c0_16 = arith.constant 0 : index
    %19 = memref.load %arg1[%c0_15, %c0_16] : memref<1x1xf32, #tpu.memory_space<smem>>
    %cst_17 = arith.constant 0.000000e+00 : f32
    %20 = vector.broadcast %cst_17 : f32 to vector<16x128xf32>
    %21 = arith.subf %20, %13 : vector<16x128xf32>
    %22 = math.exp %21 : vector<16x128xf32>
    %23 = arith.mulf %22, %5 : vector<16x128xf32>
    %24 = arith.mulf %23, %5 : vector<16x128xf32>
    %25 = arith.addf %24, %13 : vector<16x128xf32>
    %cst_18 = arith.constant 5.000000e-01 : f32
    %26 = vector.broadcast %cst_18 : f32 to vector<16x128xf32>
    %27 = arith.mulf %26, %25 : vector<16x128xf32>
    %cst_19 = arith.constant 0.000000e+00 : f32
    %28 = vector.broadcast %cst_19 : f32 to vector<16x128xf32>
    %29 = arith.subf %28, %18 : vector<16x128xf32>
    %30 = math.exp %29 : vector<16x128xf32>
    %31 = arith.mulf %30, %8 : vector<16x128xf32>
    %32 = arith.mulf %31, %8 : vector<16x128xf32>
    %33 = arith.addf %32, %18 : vector<16x128xf32>
    %34 = vector.broadcast %19 : f32 to vector<16x128xf32>
    %35 = arith.mulf %34, %33 : vector<16x128xf32>
    %36 = arith.addf %27, %35 : vector<16x128xf32>
    %37 = arith.mulf %13, %13 : vector<16x128xf32>
    %38 = arith.mulf %18, %18 : vector<16x128xf32>
    %39 = arith.addf %37, %38 : vector<16x128xf32>
    %cst_20 = arith.constant 0.00999999977 : f32
    %40 = vector.broadcast %cst_20 : f32 to vector<16x128xf32>
    %41 = arith.mulf %40, %39 : vector<16x128xf32>
    %42 = arith.addf %36, %41 : vector<16x128xf32>
    %c0_21 = arith.constant 0 : index
    %c0_22 = arith.constant 0 : index
    %43 = vector.load %arg8[%c0_21, %c0_22] : memref<1x128xf32, #tpu.memory_space<vmem>>, vector<1x128xf32>
    %cst_23 = arith.constant dense<0.000000e+00> : vector<128xf32>
    %44 = vector.multi_reduction <add>, %42, %cst_23 [0] : vector<16x128xf32> to vector<128xf32>
    %45 = vector.shape_cast %44 : vector<128xf32> to vector<1x128xf32>
    %46 = arith.addf %43, %45 : vector<1x128xf32>
    %c0_24 = arith.constant 0 : index
    %c0_25 = arith.constant 0 : index
    %47 = vector.load %arg8[%c0_24, %c0_25] : memref<1x128xf32, #tpu.memory_space<vmem>>, vector<1x128xf32>
    tpu.vector_store %arg8[%c0_24, %c0_25], %46 {strides = array<i32>} : memref<1x128xf32, #tpu.memory_space<vmem>>, vector<1x128xf32>,
    return
  }
  func.func @transform_0(%arg0: i32) -> (i32, i32) {
    %c0_i32 = arith.constant 0 : i32
    %c0_i32_0 = arith.constant 0 : i32
    %c0_i32_1 = arith.constant 0 : i32
    return %c0_i32, %c0_i32_0 : i32, i32
  }
  func.func @transform_1(%arg0: i32) -> (i32, i32) {
    %c0_i32 = arith.constant 0 : i32
    %c0_i32_0 = arith.constant 0 : i32
    return %arg0, %c0_i32 : i32, i32
  }
  func.func @transform_2(%arg0: i32) -> (i32, i32) {
    %c0_i32 = arith.constant 0 : i32
    %c0_i32_0 = arith.constant 0 : i32
    return %arg0, %c0_i32 : i32, i32
  }
  func.func @transform_3(%arg0: i32) -> (i32, i32) {
    %c0_i32 = arith.constant 0 : i32
    %c0_i32_0 = arith.constant 0 : i32
    return %arg0, %c0_i32 : i32, i32
  }
  func.func @transform_4(%arg0: i32) -> (i32, i32) {
    %c0_i32 = arith.constant 0 : i32
    %c0_i32_0 = arith.constant 0 : i32
    return %arg0, %c0_i32 : i32, i32
  }
  func.func @transform_5(%arg0: i32) -> (i32, i32) {
    %c0_i32 = arith.constant 0 : i32
    %c0_i32_0 = arith.constant 0 : i32
    return %arg0, %c0_i32 : i32, i32
  }
  func.func @transform_6(%arg0: i32) -> (i32, i32) {
    %c0_i32 = arith.constant 0 : i32
    %c0_i32_0 = arith.constant 0 : i32
    return %arg0, %c0_i32 : i32, i32
  }
  func.func @transform_7(%arg0: i32) -> (i32, i32) {
    %c0_i32 = arith.constant 0 : i32
    %c0_i32_0 = arith.constant 0 : i32
    %c0_i32_1 = arith.constant 0 : i32
    return %c0_i32, %c0_i32_0 : i32, i32
  }
}

</mosaic_0001>

<bundles_post_ra>
// kernel: tpu_custom_call.1
= control target key start
LH: loop header
LB: loop body
LE: loop exit
PB: predicated region body
PF: predicated region fallthrough
CT: control target
= control target key end

     0   :  { %13 = vsyncpa [#allocation4], 0  ;;  %s473_s0 = inlined_call_operand.<no memory space> [shape: f32[1,1], index: 0, kind: input, shape index: {}]   ;;  %s474_s1 = inlined_call_operand.hbm [shape: f32[16,128], index: 1, kind: input, shape index: {}]   ;;  %s475_s2 = inlined_call_operand.hbm [shape: f32[16,128], index: 2, kind: input, shape index: {}]   ;;  %s476_s3 = inlined_call_operand.hbm [shape: f32[16,128], index: 3, kind: input, shape index: {}]   ;;  %s477_s4 = inlined_call_operand.hbm [shape: f32[16,128], index: 4, kind: input, shape index: {}]   ;;  %s478_s5 = inlined_call_operand.hbm [shape: f32[16,128], index: 5, kind: input, shape index: {}]   ;;  %s479_s6 = inlined_call_operand.hbm [shape: f32[16,128], index: 6, kind: input, shape index: {}]   ;;  %s480_s7 = inlined_call_operand.hbm [shape: f32[1,128], index: 7, kind: output, shape index: {}]  }
   0x1   :  { %14 = vsyncpa [#allocation7], 0 }
   0x2   :  { %15 = vsyncpa [#allocation10], 0 }
   0x3   :  { %16 = vsyncpa [#allocation13], 0 }
   0x4   :  { %17 = vsyncpa [#allocation5], 0  ;;  %s381_s24 = smov [#allocation6]   ;;  %s382_s26 = smov [#allocation9]  }
   0x5   :  { %s37_s25 = sshll.u32 %s381_s24, 4  ;;  %s61_s27 = sshll.u32 %s382_s26, 4  ;;  %s38_s25 = int_to_ptr.vmem [resolvable:$true] %s37_s25  ;;  %s62_s27 = int_to_ptr.vmem [resolvable:$true] %s61_s27 }
   0x6   :  { %s239_s28 = scalar_lea.vmem %s38_s25, 256  ;;  %p244_p1 = scmp.lt.s32.totalorder %s38_s25, %s38_s25 }
   0x7   :  { %p240_p0 = scmp.ne.s32.totalorder %s38_s25, %s239_s28  ;;  %p245_p2 = scmp.lt.s32.totalorder %s239_s28, %s239_s28 }
   0x9   :  { %p246_p3 = por %p245_p2, %p244_p1 }
   0xb   :  { %p247_p4 = pnand %p246_p3, %p240_p0 }
   0xd   :  { %250 = shalt.err (!%p247_p4)
}
   0xe   :  { %s383_s29 = smov 128   ;;  %s384_s30 = smov 8  }
   0xf   :  { %43 = dma.hbm_to_vmem [thread:$0]  %s475_s2, 256, %s38_s25, [#allocation7], %s383_s29, %s383_s29, %s384_s30  }
  0x10   :  { %s259_s10 = scalar_lea.vmem %s62_s27, 256  ;;  %p264_p6 = scmp.lt.s32.totalorder %s62_s27, %s62_s27 }
  0x11   :  { %p260_p5 = scmp.ne.s32.totalorder %s62_s27, %s259_s10  ;;  %p265_p7 = scmp.lt.s32.totalorder %s259_s10, %s259_s10 }
  0x13   :  { %p266_p8 = por %p265_p7, %p264_p6 }
  0x15   :  { %p267_p9 = pnand %p266_p8, %p260_p5 }
  0x17   :  { %270 = shalt.err (!%p267_p9)
}
  0x18   :  { %67 = dma.hbm_to_vmem [thread:$0]  %s477_s4, 256, %s62_s27, [#allocation10], %s383_s29, %s383_s29, %s384_s30  }
  0x19   :  { %s385_s13 = smov [#allocation3]   ;;  %s386_s15 = smov [#allocation8]  }
  0x1a   :  { %s25_s14 = sshll.u32 %s385_s13, 4  ;;  %s49_s16 = sshll.u32 %s386_s15, 4  ;;  %s26_s14 = int_to_ptr.vmem [resolvable:$true] %s25_s14  ;;  %s50_s16 = int_to_ptr.vmem [resolvable:$true] %s49_s16 }
  0x1b   :  { %s279_s2 = scalar_lea.vmem %s26_s14, 256  ;;  %p284_p11 = scmp.lt.s32.totalorder %s26_s14, %s26_s14 }
  0x1c   :  { %p280_p10 = scmp.ne.s32.totalorder %s26_s14, %s279_s2  ;;  %p285_p12 = scmp.lt.s32.totalorder %s279_s2, %s279_s2 }
  0x1e   :  { %p286_p13 = por %p285_p12, %p284_p11 }
  0x20   :  { %p287_p0 = pnand %p286_p13, %p280_p10 }
  0x22   :  { %290 = shalt.err (!%p287_p0)
}
  0x23   :  { %31 = dma.hbm_to_vmem [thread:$0]  %s474_s1, 256, %s26_s14, [#allocation4], %s383_s29, %s383_s29, %s384_s30  }
  0x24   :  { %s299_s4 = scalar_lea.vmem %s50_s16, 256  ;;  %p304_p2 = scmp.lt.s32.totalorder %s50_s16, %s50_s16 }
  0x25   :  { %p300_p1 = scmp.ne.s32.totalorder %s50_s16, %s299_s4  ;;  %p305_p3 = scmp.lt.s32.totalorder %s299_s4, %s299_s4 }
  0x27   :  { %p306_p4 = por %p305_p3, %p304_p2 }
  0x29   :  { %p307_p5 = pnand %p306_p4, %p300_p1 }
  0x2b   :  { %310 = shalt.err (!%p307_p5)
}
  0x2c   :  { %55 = dma.hbm_to_vmem [thread:$0]  %s476_s3, 256, %s50_s16, [#allocation7], %s383_s29, %s383_s29, %s384_s30  }
  0x2d   :  { %s387_s21 = smov [#allocation11]   ;;  %s388_s23 = smov [#allocation12]  }
  0x2e   :  { %s73_s22 = sshll.u32 %s387_s21, 4  ;;  %s85_s24 = sshll.u32 %s388_s23, 4  ;;  %s74_s22 = int_to_ptr.vmem [resolvable:$true] %s73_s22  ;;  %s86_s24 = int_to_ptr.vmem [resolvable:$true] %s85_s24 }
  0x2f   :  { %s319_s1 = scalar_lea.vmem %s74_s22, 256  ;;  %p324_p7 = scmp.lt.s32.totalorder %s74_s22, %s74_s22 }
  0x30   :  { %p320_p6 = scmp.ne.s32.totalorder %s74_s22, %s319_s1  ;;  %p325_p8 = scmp.lt.s32.totalorder %s319_s1, %s319_s1 }
  0x32   :  { %p326_p9 = por %p325_p8, %p324_p7 }
  0x34   :  { %p327_p10 = pnand %p326_p9, %p320_p6 }
  0x36   :  { %330 = shalt.err (!%p327_p10)
}
  0x37   :  { %79 = dma.hbm_to_vmem [thread:$0]  %s478_s5, 256, %s74_s22, [#allocation10], %s383_s29, %s383_s29, %s384_s30  }
  0x38   :  { %s339_s3 = scalar_lea.vmem %s86_s24, 256  ;;  %p344_p12 = scmp.lt.s32.totalorder %s86_s24, %s86_s24 }
  0x39   :  { %p340_p11 = scmp.ne.s32.totalorder %s86_s24, %s339_s3  ;;  %p345_p13 = scmp.lt.s32.totalorder %s339_s3, %s339_s3 }
  0x3b   :  { %p346_p0 = por %p345_p13, %p344_p12 }
  0x3d   :  { %p347_p1 = pnand %p346_p0, %p340_p11 }
  0x3f   :  { %350 = shalt.err (!%p347_p1)
}
  0x40   :  { %91 = dma.hbm_to_vmem [thread:$0]  %s479_s6, 256, %s86_s24, [#allocation13], %s383_s29, %s383_s29, %s384_s30  }
  0x41   :  { %371 = dma.done.wait [#allocation4], 256  }
  0x42   :  { %372 = vsyncadd [#allocation4], 4294967040 }
  0x43   :  { %373 = dma.done.wait [#allocation7], 512  }
  0x44   :  { %374 = vsyncadd [#allocation7], 4294966784 }
  0x45   :  { %375 = dma.done.wait [#allocation10], 512  }
  0x46   :  { %376 = vsyncadd [#allocation10], 4294966784 }
  0x47   :  { %377 = dma.done.wait [#allocation13], 256  }
  0x48   :  { %378 = vsyncadd [#allocation13], 4294967040  ;;  %v389_v0 = vmov 0.0   ;;  %v127_v1 = vld [vmem:[#allocation11] sm:$0xff]  ;;  %v128_v2 = vld [vmem:[#allocation11 + $0x8] sm:$0xff]  ;;  %v166_v48 = vstv %s473_s0  ;;  %s390_s0 = smov [#allocation14]  }
  0x49   :  { %114 = vst [vmem:[#allocation14] sm:$0x1] %v389_v0  ;;  %v209_v3 = vclamps-f32 %v127_v1, 10.0  ;;  %v133_v4 = vld [vmem:[#allocation12] sm:$0xff]  ;;  %v134_v5 = vld [vmem:[#allocation12 + $0x8] sm:$0xff]  ;;  %v210_v6 = vclamps-f32 %v128_v2, 10.0 }
  0x4a   :  { %v211_v7 = vclamps-f32 %v133_v4, 10.0  ;;  %v212_v8 = vclamps-f32 %v134_v5, 10.0  ;;  %v115_v17 = vld [vmem:[#allocation3] sm:$0xff]  ;;  %v116_v19 = vld [vmem:[#allocation3 + $0x8] sm:$0xff]  ;;  %v121_v21 = vld [vmem:[#allocation6] sm:$0xff]  ;;  %s197_s29 = sshll.u32 %s390_s0, 4  ;;  %s198_s29 = int_to_ptr.vmem [resolvable:$true] %s197_s29 }
  0x4b   :  { %v140_v9 = vsub.f32 0.0, %v209_v3  ;;  %v141_v10 = vsub.f32 0.0, %v210_v6  ;;  %v117_v18 = vld [vmem:[#allocation8] sm:$0xff]  ;;  %v118_v20 = vld [vmem:[#allocation8 + $0x8] sm:$0xff]  ;;  %v123_v22 = vld [vmem:[#allocation9] sm:$0xff]  ;;  %v171_v32 = vmul.f32 %v209_v3, %v209_v3  ;;  %v172_v36 = vmul.f32 %v210_v6, %v210_v6  ;;  %s351_s30 = scalar_lea.vmem %s198_s29, 16  ;;  %p356_p3 = scmp.lt.s32.totalorder %s198_s29, %s198_s29 }
  0x4c   :  { %v154_v11 = vsub.f32 0.0, %v211_v7  ;;  %v155_v12 = vsub.f32 0.0, %v212_v8  ;;  %v119_v23 = vsub.f32 %v115_v17, %v117_v18  ;;  %v122_v24 = vld [vmem:[#allocation6 + $0x8] sm:$0xff]  ;;  %v120_v26 = vsub.f32 %v116_v19, %v118_v20  ;;  %p352_p2 = scmp.ne.s32.totalorder %s198_s29, %s351_s30  ;;  %s355_s8 = scalar_lea.vmem %s198_s29, 32 }
  0x4d   :  { %v142_v13 = vmul.f32 1.442695, %v140_v9  ;;  %v144_v14 = vmul.f32 1.442695, %v141_v10  ;;  %v124_v25 = vld [vmem:[#allocation9 + $0x8] sm:$0xff]  ;;  %v125_v27 = vsub.f32 %v121_v21, %v123_v22  ;;  %v173_v33 = vmul.f32 %v211_v7, %v211_v7  ;;  %p357_p4 = scmp.lt.s32.totalorder %s355_s8, %s351_s30 }
  0x4e   :  { %v156_v15 = vmul.f32 1.442695, %v154_v11  ;;  %v158_v16 = vmul.f32 1.442695, %v155_v12  ;;  %v126_v29 = vsub.f32 %v122_v24, %v124_v25  ;;  %v174_v37 = vmul.f32 %v212_v8, %v212_v8 }
  0x4f   :  { %223 = vpow2.f32 %v142_v13  ;;  %v175_v45 = vadd.f32 %v173_v33, %v171_v32  ;;  %p358_p5 = por %p357_p4, %p356_p3 }
  0x50   :  { %225 = vpow2.f32 %v144_v14  ;;  %v176_v49 = vadd.f32 %v174_v37, %v172_v36  ;;  %v181_v4 = vld [vmem:[#allocation14] sm:$0x1] }
  0x51   :  { %227 = vpow2.f32 %v156_v15  ;;  %v177_v55 = vmul.f32 0.01, %v175_v45  ;;  %p359_p6 = pnand %p358_p5, %p352_p2 }
  0x52   :  { %229 = vpow2.f32 %v158_v16  ;;  %v178_v57 = vmul.f32 0.01, %v176_v49 }
  0x5c   :  { %v224_v28 = vpop.eup %223 }
  0x5d   :  { %v226_v30 = vpop.eup %225  ;;  %v146_v31 = vmul.f32 %v224_v28, %v119_v23 }
  0x5e   :  { %v228_v34 = vpop.eup %227  ;;  %v147_v35 = vmul.f32 %v226_v30, %v120_v26 }
  0x5f   :  { %v230_v38 = vpop.eup %229  ;;  %v148_v39 = vmul.f32 %v146_v31, %v119_v23  ;;  %v160_v40 = vmul.f32 %v228_v34, %v125_v27 }
  0x60   :  { %v149_v41 = vmul.f32 %v147_v35, %v120_v26  ;;  %v161_v42 = vmul.f32 %v230_v38, %v126_v29 }
  0x61   :  { %v150_v43 = vadd.f32 %v209_v3, %v148_v39  ;;  %v162_v44 = vmul.f32 %v160_v40, %v125_v27 }
  0x62   :  { %v151_v46 = vadd.f32 %v210_v6, %v149_v41  ;;  %v163_v47 = vmul.f32 %v161_v42, %v126_v29 }
  0x63   :  { %v152_v50 = vmul.f32 0.5, %v150_v43  ;;  %v164_v51 = vadd.f32 %v211_v7, %v162_v44 }
  0x64   :  { %v153_v52 = vmul.f32 0.5, %v151_v46  ;;  %v165_v53 = vadd.f32 %v212_v8, %v163_v47 }
  0x65   :  { %v167_v54 = vmul.f32 %v166_v48, %v164_v51 }
  0x66   :  { %v168_v56 = vmul.f32 %v166_v48, %v165_v53 }
  0x67   :  { %v169_v58 = vadd.f32 %v167_v54, %v152_v50 }
  0x68   :  { %v170_v59 = vadd.f32 %v168_v56, %v153_v52 }
  0x69   :  { %v179_v60 = vadd.f32 %v177_v55, %v169_v58 }
  0x6a   :  { %v180_v61 = vadd.f32 %v178_v57, %v170_v59 }
  0x6c   :  { %v182_v62 = vadd.f32 %v180_v61, %v179_v60 }
  0x6e   :  { %v183_v63 = vrot.slane %v182_v62, 4 }
  0x70   :  { %v184_v0 = vadd.f32 %v183_v63, %v182_v62 }
  0x72   :  { %v185_v1 = vrot.slane %v184_v0, 2 }
  0x74   :  { %v186_v2 = vadd.f32 %v185_v1, %v184_v0 }
  0x76   :  { %v187_v3 = vrot.slane %v186_v2, 1 }
  0x78   :  { %v188_v5 = vadd.f32 %v187_v3, %v186_v2 }
  0x7a   :  { %v189_v6 = vadd.f32 %v188_v5, %v181_v4 }
  0x7c   :  { %190 = vst [vmem:[#allocation14] sm:$0x1] %v189_v6 }
  0x7d   :  { %362 = shalt.err (!%p359_p6)
}
  0x7e   :  { %200 = dma.vmem_to_hbm [thread:$0]  %s198_s29, 16, %s480_s7, [#allocation5]  }
  0x7f   :  { %379 = dma.done.wait [#allocation5], 16  }
  0x80   :  { %380 = vsyncadd [#allocation5], 4294967280 }
  0x81   :  { %204 = vsyncpa [#allocation4], 1 }
  0x82   :  { %205 = vsyncpa [#allocation7], 1 }
  0x83   :  { %206 = vsyncpa [#allocation10], 1 }
  0x84   :  { %207 = vsyncpa [#allocation13], 1 }
  0x85   :  { %208 = vsyncpa [#allocation5], 1 }

</bundles_post_ra>
